<compile_context>
chip_gen: v7x
topology: tpu7x:2x2x1
jax: 0.10.0
libtpu: 0.0.40
codegen_flags: <defaults>
</compile_context>

<pallas_src>
import functools

import numpy as np
import jax
import jax.numpy as jnp
from jax import lax
from jax.experimental import pallas as pl
from jax.experimental.pallas import tpu as pltpu

EPS = 1e-5


def _dw_stats_kernel(x_ref, w_ref, mask_ref, acc_ref, stat_ref, *, width):
    # x_ref:    (1, Cb, HWp)  input channel-block (channels on sublanes, flat HW on lanes)
    # w_ref:    (Cb, 9)       depthwise taps, tap t = kh*3 + kw on the lane axis
    # mask_ref: (4, HWp)      [row>0, row<H-1, col>0, col<W-1], all zero on pad lanes
    # acc_ref:  (1, Cb, HWp)  depthwise conv output
    # stat_ref: (1, Cb, 2)    per-channel [sum, sum-of-squares]
    x = x_ref[0]                      # (Cb, HWp)
    w = w_ref[...]                    # taps hoisted once (no per-tap ref slice)
    masks = mask_ref[...]
    m_top, m_bot = masks[0:1, :], masks[1:2, :]
    m_l, m_r = masks[2:3, :], masks[3:4, :]
    hwp = x.shape[1]

    # Depthwise 3x3, stride 1; zero padding realized via the edge masks.
    # Width rolls are recomputed per kernel row (XLU slot is otherwise idle) to
    # keep live vreg/VMEM state low instead of holding 3 full copies of x.
    acc = None
    for dh in (-1, 0, 1):
        t0 = (dh + 1) * 3
        inner = (pltpu.roll(x, shift=1, axis=1) * m_l) * w[:, t0:t0 + 1]      # x[.., c-1]
        inner = inner + x * w[:, t0 + 1:t0 + 2]                               # x[.., c  ]
        inner = inner + (pltpu.roll(x, shift=hwp - 1, axis=1) * m_r) * w[:, t0 + 2:t0 + 3]
        if dh == -1:      # tap reads row r-1 -> shift data down by one row
            inner = pltpu.roll(inner, shift=width, axis=1) * m_top
        elif dh == 1:     # tap reads row r+1 -> shift data up by one row
            inner = pltpu.roll(inner, shift=hwp - width, axis=1) * m_bot
        acc = inner if acc is None else acc + inner

    acc_ref[0] = acc
    # Pad lanes of acc are exactly zero, so plain lane reduces give exact stats.
    s1 = jnp.sum(acc, axis=1, keepdims=True)
    s2 = jnp.sum(acc * acc, axis=1, keepdims=True)
    stat_ref[0] = jnp.concatenate([s1, s2], axis=1)


def _bn_relu_pw_kernel(acc_ref, scale_ref, shift_ref, w2_ref, out_ref):
    # acc_ref:   (1, C, L)    depthwise output lane-block
    # scale_ref: (C, 1)       fused BN scale
    # shift_ref: (C, 1)       fused BN shift
    # w2_ref:    (Cout, C)    1x1 conv weight
    # out_ref:   (1, Cout, L) lane-dense output block (full-width stores)
    a = acc_ref[0]
    y = jnp.maximum(a * scale_ref[...] + shift_ref[...], 0.0)
    # TODO(synk): on v6e/v7x the matmul operands could be cast to bf16 to halve
    # MXU operand traffic; kept f32 here for exact-tolerance parity with torch.
    out_ref[0] = jnp.dot(w2_ref[...], y, preferred_element_type=jnp.float32)


def _channel_block(c):
    for cand in (32, 24, 16, 8):
        if c % cand == 0:
            return cand
    return c


def _lane_block(hwp, cap=1024):
    for cand in range(cap, 0, -128):
        if hwp % cand == 0:
            return cand
    return hwp


@jax.jit
def mnasnet_block(x_nchw, w_dw, gamma, beta, w_pw):
    """x_nchw: (N,72,H,W); w_dw: (72,1,3,3); gamma/beta: (72,); w_pw: (24,72,1,1).
    Returns (N,24,H,W) = conv1x1(relu(batchnorm_train(depthwise3x3(x))))."""
    N, C, H, W = x_nchw.shape
    Cout = w_pw.shape[0]
    HW = H * W
    HWp = ((HW + 127) // 128) * 128            # lane-dense padded spatial axis

    # Activation prep: free reshape + zero pad of the flat spatial axis.
    x = x_nchw.reshape(N, C, HW).astype(jnp.float32)
    if HWp != HW:
        x = jnp.pad(x, ((0, 0), (0, 0), (0, HWp - HW)))

    # Weight prep (tiny arrays).
    wdw = w_dw.reshape(C, 9).astype(jnp.float32)       # taps on lanes, channels on sublanes
    w2 = w_pw.reshape(Cout, C).astype(jnp.float32)

    # Compile-time edge-validity masks (also zero on the pad lanes).
    idx = np.arange(HWp)
    r, c, valid = idx // W, idx % W, idx < HW
    masks = jnp.asarray(np.stack([(r > 0) & valid, (r < H - 1) & valid,
                                  (c > 0) & valid, (c < W - 1) & valid]
                                 ).astype(np.float32))          # (4, HWp)

    Cb = _channel_block(C)
    vmem_cap = 32 * 1024 * 1024                 # safe on v5e/v6e (128 MiB) and v7x (64 MiB)

    # ---------------- pass 1: depthwise 3x3 + BN partial stats ----------------
    acc, stats = pl.pallas_call(
        functools.partial(_dw_stats_kernel, width=W),
        grid=(N, C // Cb),
        in_specs=[
            pl.BlockSpec((1, Cb, HWp), lambda n, cb: (n, cb, 0)),
            pl.BlockSpec((Cb, 9), lambda n, cb: (cb, 0)),
            pl.BlockSpec((4, HWp), lambda n, cb: (0, 0)),
        ],
        out_specs=[
            pl.BlockSpec((1, Cb, HWp), lambda n, cb: (n, cb, 0)),
            pl.BlockSpec((1, Cb, 2), lambda n, cb: (n, cb, 0)),
        ],
        out_shape=(jax.ShapeDtypeStruct((N, C, HWp), jnp.float32),
                   jax.ShapeDtypeStruct((N, C, 2), jnp.float32)),
        compiler_params=pltpu.CompilerParams(
            dimension_semantics=("parallel", "parallel"),
            vmem_limit_bytes=vmem_cap),
        cost_estimate=pl.CostEstimate(
            flops=21 * N * C * HWp, transcendentals=0,
            bytes_accessed=8 * N * C * HWp),
    )(x, wdw, masks)

    # -------- BN (training mode) -> fused per-channel scale/shift (tiny) ------
    cnt = float(N * H * W)                      # pad lanes contribute exact zeros
    s1 = jnp.sum(stats[:, :, 0], axis=0)
    s2 = jnp.sum(stats[:, :, 1], axis=0)
    mean = s1 / cnt
    var = jnp.maximum(s2 / cnt - mean * mean, 0.0)   # biased variance (torch train mode)
    scale1 = gamma.astype(jnp.float32) * lax.rsqrt(var + EPS)
    shift1 = beta.astype(jnp.float32) - mean * scale1
    scale = scale1.reshape(C, 1)
    shift = shift1.reshape(C, 1)
    # TODO(synk): torch's running_mean/running_var buffer update (training-mode
    # side effect) is not reproduced; the forward output does not depend on it.

    # -------- pass 2: normalize + ReLU + 1x1 conv on the MXU (lane-dense) -----
    L = _lane_block(HWp)
    out_flat = pl.pallas_call(
        _bn_relu_pw_kernel,
        grid=(N, HWp // L),
        in_specs=[
            pl.BlockSpec((1, C, L), lambda n, j: (n, 0, j)),
            pl.BlockSpec((C, 1), lambda n, j: (0, 0)),
            pl.BlockSpec((C, 1), lambda n, j: (0, 0)),
            pl.BlockSpec((Cout, C), lambda n, j: (0, 0)),
        ],
        out_specs=pl.BlockSpec((1, Cout, L), lambda n, j: (n, 0, j)),
        out_shape=jax.ShapeDtypeStruct((N, Cout, HWp), jnp.float32),
        compiler_params=pltpu.CompilerParams(
            dimension_semantics=("parallel", "parallel"),
            vmem_limit_bytes=vmem_cap),
        cost_estimate=pl.CostEstimate(
            flops=2 * N * Cout * C * HWp + 3 * N * C * HWp, transcendentals=0,
            bytes_accessed=4 * N * (C + Cout) * HWp),
    )(acc, scale, shift, w2)

    # Slice off the lane padding; (N, Cout, HW) -> NCHW is a free reshape.
    return out_flat[:, :, :HW].reshape(N, Cout, H, W)


def _reference(x_nchw, w_dw, gamma, beta, w_pw):
    """Pure-JAX reference mirroring torch semantics (training-mode BN)."""
    C = x_nchw.shape[1]
    y = lax.conv_general_dilated(
        x_nchw, w_dw, window_strides=(1, 1), padding=((1, 1), (1, 1)),
        dimension_numbers=("NCHW", "OIHW", "NCHW"), feature_group_count=C)
    mean = jnp.mean(y, axis=(0, 2, 3), keepdims=True)
    var = jnp.mean((y - mean) ** 2, axis=(0, 2, 3), keepdims=True)
    y = (y - mean) * lax.rsqrt(var + EPS) * gamma.reshape(1, C, 1, 1) + beta.reshape(1, C, 1, 1)
    y = jnp.maximum(y, 0.0)
    out = lax.conv_general_dilated(
        y, w_pw, window_strides=(1, 1), padding="VALID",
        dimension_numbers=("NCHW", "OIHW", "NCHW"))
    return out


if __name__ == "__main__":
    key = jax.random.PRNGKey(0)
    k_x, k_dw, k_pw, k_g, k_b = jax.random.split(key, 5)

    # Channels fixed by the module (72 -> 24); small spatial size (14x14 = 196
    # lanes -> padded to 256) so the padding/mask path is exercised.
    N, C, H, W = 2, 72, 14, 14
    Cout = 24

    x = jax.random.normal(k_x, (N, C, H, W), jnp.float32)
    w_dw = jax.random.normal(k_dw, (C, 1, 3, 3), jnp.float32) * 0.1     # depthwise weight
    w_pw = jax.random.normal(k_pw, (Cout, C, 1, 1), jnp.float32) * 0.1  # 1x1 conv weight
    gamma = 1.0 + 0.1 * jax.random.normal(k_g, (C,), jnp.float32)       # BN affine weight
    beta = 0.1 * jax.random.normal(k_b, (C,), jnp.float32)              # BN affine bias

    out = jax.block_until_ready(mnasnet_block(x, w_dw, gamma, beta, w_pw))

    ref = _reference(x, w_dw, gamma, beta, w_pw)
    assert out.shape == (N, Cout, H, W)
    assert jnp.allclose(out, ref, atol=1e-4, rtol=1e-4), float(jnp.max(jnp.abs(out - ref)))

    print("KERNEL_OK")
</pallas_src>

<mosaic_0001>
module attributes {stable_mosaic.version = 11 : i64} {
  func.func @_dw_stats_kernel(%arg0: i32, %arg1: i32, %arg2: memref<1x24x256xf32, #tpu.memory_space<vmem>>, %arg3: memref<24x9xf32, #tpu.memory_space<vmem>>, %arg4: memref<4x256xf32, #tpu.memory_space<vmem>>, %arg5: memref<1x24x256xf32, #tpu.memory_space<vmem>>, %arg6: memref<1x24x2xf32, #tpu.memory_space<vmem>>) attributes {dimension_semantics = [#tpu.dimension_semantics<parallel>, #tpu.dimension_semantics<parallel>], iteration_bounds = array<i64: 2, 3>, scalar_prefetch = 0 : i64, scratch_operands = 0 : i64, tpu.core_type = #tpu.core_type<tc>, window_params = [{transform_indices = @transform_0, window_bounds = array<i64: 1, 24, 256>}, {transform_indices = @transform_1, window_bounds = array<i64: 24, 9>}, {pipeline_mode = #tpu.pipeline_mode<synchronous>, transform_indices = @transform_2, window_bounds = array<i64: 4, 256>}, {transform_indices = @transform_3, window_bounds = array<i64: 1, 24, 256>}, {transform_indices = @transform_4, window_bounds = array<i64: 1, 24, 2>}]} {
    %c0 = arith.constant 0 : index
    %c0_0 = arith.constant 0 : index
    %c0_1 = arith.constant 0 : index
    %0 = vector.load %arg2[%c0, %c0_0, %c0_1] : memref<1x24x256xf32, #tpu.memory_space<vmem>>, vector<1x24x256xf32>
    %1 = vector.shape_cast %0 : vector<1x24x256xf32> to vector<24x256xf32>
    %c0_2 = arith.constant 0 : index
    %c0_3 = arith.constant 0 : index
    %2 = vector.load %arg3[%c0_2, %c0_3] : memref<24x9xf32, #tpu.memory_space<vmem>>, vector<24x9xf32>
    %c0_4 = arith.constant 0 : index
    %c0_5 = arith.constant 0 : index
    %3 = vector.load %arg4[%c0_4, %c0_5] : memref<4x256xf32, #tpu.memory_space<vmem>>, vector<4x256xf32>
    %4 = vector.extract_strided_slice %3 {offsets = [0, 0], sizes = [1, 256], strides = [1, 1]} : vector<4x256xf32> to vector<1x256xf32>
    %5 = vector.extract_strided_slice %3 {offsets = [1, 0], sizes = [1, 256], strides = [1, 1]} : vector<4x256xf32> to vector<1x256xf32>
    %6 = vector.extract_strided_slice %3 {offsets = [2, 0], sizes = [1, 256], strides = [1, 1]} : vector<4x256xf32> to vector<1x256xf32>
    %7 = vector.extract_strided_slice %3 {offsets = [3, 0], sizes = [1, 256], strides = [1, 1]} : vector<4x256xf32> to vector<1x256xf32>
    %c1_i32 = arith.constant 1 : i32
    %8 = tpu.dynamic_rotate %1 by %c1_i32 dim 1 : vector<24x256xf32>, i32 -> vector<24x256xf32>
    %9 = vector.broadcast %6 : vector<1x256xf32> to vector<24x256xf32>
    %10 = arith.mulf %8, %9 : vector<24x256xf32>
    %11 = vector.extract_strided_slice %2 {offsets = [0, 0], sizes = [24, 1], strides = [1, 1]} : vector<24x9xf32> to vector<24x1xf32>
    %12 = vector.broadcast %11 : vector<24x1xf32> to vector<24x256xf32>
    %13 = arith.mulf %10, %12 : vector<24x256xf32>
    %14 = vector.extract_strided_slice %2 {offsets = [0, 1], sizes = [24, 1], strides = [1, 1]} : vector<24x9xf32> to vector<24x1xf32>
    %15 = vector.broadcast %14 : vector<24x1xf32> to vector<24x256xf32>
    %16 = arith.mulf %1, %15 : vector<24x256xf32>
    %17 = arith.addf %13, %16 : vector<24x256xf32>
    %c255_i32 = arith.constant 255 : i32
    %18 = tpu.dynamic_rotate %1 by %c255_i32 dim 1 : vector<24x256xf32>, i32 -> vector<24x256xf32>
    %19 = vector.broadcast %7 : vector<1x256xf32> to vector<24x256xf32>
    %20 = arith.mulf %18, %19 : vector<24x256xf32>
    %21 = vector.extract_strided_slice %2 {offsets = [0, 2], sizes = [24, 1], strides = [1, 1]} : vector<24x9xf32> to vector<24x1xf32>
    %22 = vector.broadcast %21 : vector<24x1xf32> to vector<24x256xf32>
    %23 = arith.mulf %20, %22 : vector<24x256xf32>
    %24 = arith.addf %17, %23 : vector<24x256xf32>
    %c14_i32 = arith.constant 14 : i32
    %25 = tpu.dynamic_rotate %24 by %c14_i32 dim 1 : vector<24x256xf32>, i32 -> vector<24x256xf32>
    %26 = vector.broadcast %4 : vector<1x256xf32> to vector<24x256xf32>
    %27 = arith.mulf %25, %26 : vector<24x256xf32>
    %c1_i32_6 = arith.constant 1 : i32
    %28 = tpu.dynamic_rotate %1 by %c1_i32_6 dim 1 : vector<24x256xf32>, i32 -> vector<24x256xf32>
    %29 = vector.broadcast %6 : vector<1x256xf32> to vector<24x256xf32>
    %30 = arith.mulf %28, %29 : vector<24x256xf32>
    %31 = vector.extract_strided_slice %2 {offsets = [0, 3], sizes = [24, 1], strides = [1, 1]} : vector<24x9xf32> to vector<24x1xf32>
    %32 = vector.broadcast %31 : vector<24x1xf32> to vector<24x256xf32>
    %33 = arith.mulf %30, %32 : vector<24x256xf32>
    %34 = vector.extract_strided_slice %2 {offsets = [0, 4], sizes = [24, 1], strides = [1, 1]} : vector<24x9xf32> to vector<24x1xf32>
    %35 = vector.broadcast %34 : vector<24x1xf32> to vector<24x256xf32>
    %36 = arith.mulf %1, %35 : vector<24x256xf32>
    %37 = arith.addf %33, %36 : vector<24x256xf32>
    %c255_i32_7 = arith.constant 255 : i32
    %38 = tpu.dynamic_rotate %1 by %c255_i32_7 dim 1 : vector<24x256xf32>, i32 -> vector<24x256xf32>
    %39 = vector.broadcast %7 : vector<1x256xf32> to vector<24x256xf32>
    %40 = arith.mulf %38, %39 : vector<24x256xf32>
    %41 = vector.extract_strided_slice %2 {offsets = [0, 5], sizes = [24, 1], strides = [1, 1]} : vector<24x9xf32> to vector<24x1xf32>
    %42 = vector.broadcast %41 : vector<24x1xf32> to vector<24x256xf32>
    %43 = arith.mulf %40, %42 : vector<24x256xf32>
    %44 = arith.addf %37, %43 : vector<24x256xf32>
    %45 = arith.addf %27, %44 : vector<24x256xf32>
    %c1_i32_8 = arith.constant 1 : i32
    %46 = tpu.dynamic_rotate %1 by %c1_i32_8 dim 1 : vector<24x256xf32>, i32 -> vector<24x256xf32>
    %47 = vector.broadcast %6 : vector<1x256xf32> to vector<24x256xf32>
    %48 = arith.mulf %46, %47 : vector<24x256xf32>
    %49 = vector.extract_strided_slice %2 {offsets = [0, 6], sizes = [24, 1], strides = [1, 1]} : vector<24x9xf32> to vector<24x1xf32>
    %50 = vector.broadcast %49 : vector<24x1xf32> to vector<24x256xf32>
    %51 = arith.mulf %48, %50 : vector<24x256xf32>
    %52 = vector.extract_strided_slice %2 {offsets = [0, 7], sizes = [24, 1], strides = [1, 1]} : vector<24x9xf32> to vector<24x1xf32>
    %53 = vector.broadcast %52 : vector<24x1xf32> to vector<24x256xf32>
    %54 = arith.mulf %1, %53 : vector<24x256xf32>
    %55 = arith.addf %51, %54 : vector<24x256xf32>
    %c255_i32_9 = arith.constant 255 : i32
    %56 = tpu.dynamic_rotate %1 by %c255_i32_9 dim 1 : vector<24x256xf32>, i32 -> vector<24x256xf32>
    %57 = vector.broadcast %7 : vector<1x256xf32> to vector<24x256xf32>
    %58 = arith.mulf %56, %57 : vector<24x256xf32>
    %59 = vector.extract_strided_slice %2 {offsets = [0, 8], sizes = [24, 1], strides = [1, 1]} : vector<24x9xf32> to vector<24x1xf32>
    %60 = vector.broadcast %59 : vector<24x1xf32> to vector<24x256xf32>
    %61 = arith.mulf %58, %60 : vector<24x256xf32>
    %62 = arith.addf %55, %61 : vector<24x256xf32>
    %c242_i32 = arith.constant 242 : i32
    %63 = tpu.dynamic_rotate %62 by %c242_i32 dim 1 : vector<24x256xf32>, i32 -> vector<24x256xf32>
    %64 = vector.broadcast %5 : vector<1x256xf32> to vector<24x256xf32>
    %65 = arith.mulf %63, %64 : vector<24x256xf32>
    %66 = arith.addf %45, %65 : vector<24x256xf32>
    %c0_10 = arith.constant 0 : index
    %c0_11 = arith.constant 0 : index
    %c0_12 = arith.constant 0 : index
    %67 = vector.load %arg5[%c0_10, %c0_11, %c0_12] : memref<1x24x256xf32, #tpu.memory_space<vmem>>, vector<1x24x256xf32>
    %68 = vector.shape_cast %67 : vector<1x24x256xf32> to vector<24x256xf32>
    %69 = vector.shape_cast %66 : vector<24x256xf32> to vector<1x24x256xf32>
    tpu.vector_store %arg5[%c0_10, %c0_11, %c0_12], %69 {strides = array<i32>} : memref<1x24x256xf32, #tpu.memory_space<vmem>>, vector<1x24x256xf32>,
    %cst = arith.constant dense<0.000000e+00> : vector<24xf32>
    %70 = vector.multi_reduction <add>, %66, %cst [1] : vector<24x256xf32> to vector<24xf32>
    %71 = vector.shape_cast %70 : vector<24xf32> to vector<24x1xf32>
    %72 = arith.mulf %66, %66 : vector<24x256xf32>
    %cst_13 = arith.constant dense<0.000000e+00> : vector<24xf32>
    %73 = vector.multi_reduction <add>, %72, %cst_13 [1] : vector<24x256xf32> to vector<24xf32>
    %74 = vector.shape_cast %73 : vector<24xf32> to vector<24x1xf32>
    %75 = tpu.concatenate %71, %74 in 1 : vector<24x1xf32>, vector<24x1xf32> -> vector<24x2xf32>
    %c0_14 = arith.constant 0 : index
    %c0_15 = arith.constant 0 : index
    %c0_16 = arith.constant 0 : index
    %76 = vector.load %arg6[%c0_14, %c0_15, %c0_16] : memref<1x24x2xf32, #tpu.memory_space<vmem>>, vector<1x24x2xf32>
    %77 = vector.shape_cast %76 : vector<1x24x2xf32> to vector<24x2xf32>
    %78 = vector.shape_cast %75 : vector<24x2xf32> to vector<1x24x2xf32>
    tpu.vector_store %arg6[%c0_14, %c0_15, %c0_16], %78 {strides = array<i32>} : memref<1x24x2xf32, #tpu.memory_space<vmem>>, vector<1x24x2xf32>,
    return
  }
  func.func @transform_0(%arg0: i32, %arg1: i32) -> (i32, i32, i32) {
    %c0_i32 = arith.constant 0 : i32
    %c0_i32_0 = arith.constant 0 : i32
    return %arg0, %arg1, %c0_i32 : i32, i32, i32
  }
  func.func @transform_1(%arg0: i32, %arg1: i32) -> (i32, i32) {
    %c0_i32 = arith.constant 0 : i32
    %c0_i32_0 = arith.constant 0 : i32
    return %arg1, %c0_i32 : i32, i32
  }
  func.func @transform_2(%arg0: i32, %arg1: i32) -> (i32, i32) {
    %c0_i32 = arith.constant 0 : i32
    %c0_i32_0 = arith.constant 0 : i32
    %c0_i32_1 = arith.constant 0 : i32
    return %c0_i32, %c0_i32_0 : i32, i32
  }
  func.func @transform_3(%arg0: i32, %arg1: i32) -> (i32, i32, i32) {
    %c0_i32 = arith.constant 0 : i32
    %c0_i32_0 = arith.constant 0 : i32
    return %arg0, %arg1, %c0_i32 : i32, i32, i32
  }
  func.func @transform_4(%arg0: i32, %arg1: i32) -> (i32, i32, i32) {
    %c0_i32 = arith.constant 0 : i32
    %c0_i32_0 = arith.constant 0 : i32
    return %arg0, %arg1, %c0_i32 : i32, i32, i32
  }
}

module attributes {stable_mosaic.version = 11 : i64} {
  func.func @_bn_relu_pw_kernel(%arg0: i32, %arg1: i32, %arg2: memref<1x72x256xf32, #tpu.memory_space<vmem>>, %arg3: memref<72x1xf32, #tpu.memory_space<vmem>>, %arg4: memref<72x1xf32, #tpu.memory_space<vmem>>, %arg5: memref<24x72xf32, #tpu.memory_space<vmem>>, %arg6: memref<1x24x256xf32, #tpu.memory_space<vmem>>) attributes {dimension_semantics = [#tpu.dimension_semantics<parallel>, #tpu.dimension_semantics<parallel>], iteration_bounds = array<i64: 2, 1>, scalar_prefetch = 0 : i64, scratch_operands = 0 : i64, tpu.core_type = #tpu.core_type<tc>, window_params = [{transform_indices = @transform_0, window_bounds = array<i64: 1, 72, 256>}, {pipeline_mode = #tpu.pipeline_mode<synchronous>, transform_indices = @transform_1, window_bounds = array<i64: 72, 1>}, {pipeline_mode = #tpu.pipeline_mode<synchronous>, transform_indices = @transform_2, window_bounds = array<i64: 72, 1>}, {pipeline_mode = #tpu.pipeline_mode<synchronous>, transform_indices = @transform_3, window_bounds = array<i64: 24, 72>}, {transform_indices = @transform_4, window_bounds = array<i64: 1, 24, 256>}]} {
    %c0 = arith.constant 0 : index
    %c0_0 = arith.constant 0 : index
    %c0_1 = arith.constant 0 : index
    %0 = vector.load %arg2[%c0, %c0_0, %c0_1] : memref<1x72x256xf32, #tpu.memory_space<vmem>>, vector<1x72x256xf32>
    %1 = vector.shape_cast %0 : vector<1x72x256xf32> to vector<72x256xf32>
    %c0_2 = arith.constant 0 : index
    %c0_3 = arith.constant 0 : index
    %2 = vector.load %arg3[%c0_2, %c0_3] : memref<72x1xf32, #tpu.memory_space<vmem>>, vector<72x1xf32>
    %3 = vector.broadcast %2 : vector<72x1xf32> to vector<72x256xf32>
    %4 = arith.mulf %1, %3 : vector<72x256xf32>
    %c0_4 = arith.constant 0 : index
    %c0_5 = arith.constant 0 : index
    %5 = vector.load %arg4[%c0_4, %c0_5] : memref<72x1xf32, #tpu.memory_space<vmem>>, vector<72x1xf32>
    %6 = vector.broadcast %5 : vector<72x1xf32> to vector<72x256xf32>
    %7 = arith.addf %4, %6 : vector<72x256xf32>
    %cst = arith.constant 0.000000e+00 : f32
    %8 = vector.broadcast %cst : f32 to vector<72x256xf32>
    %9 = arith.maximumf %7, %8 : vector<72x256xf32>
    %c0_6 = arith.constant 0 : index
    %c0_7 = arith.constant 0 : index
    %10 = vector.load %arg5[%c0_6, %c0_7] : memref<24x72xf32, #tpu.memory_space<vmem>>, vector<24x72xf32>
    %cst_8 = arith.constant dense<0.000000e+00> : vector<24x256xf32>
    %11 = tpu.matmul %10, %9, %cst_8 {dimension_numbers = #tpu.dot_dimension_numbers<[1], [0], [0], [1], [0, 0, 1, 1], [], []>} : vector<24x72xf32>, vector<72x256xf32>, vector<24x256xf32> -> vector<24x256xf32>
    %c0_9 = arith.constant 0 : index
    %c0_10 = arith.constant 0 : index
    %c0_11 = arith.constant 0 : index
    %12 = vector.load %arg6[%c0_9, %c0_10, %c0_11] : memref<1x24x256xf32, #tpu.memory_space<vmem>>, vector<1x24x256xf32>
    %13 = vector.shape_cast %12 : vector<1x24x256xf32> to vector<24x256xf32>
    %14 = vector.shape_cast %11 : vector<24x256xf32> to vector<1x24x256xf32>
    tpu.vector_store %arg6[%c0_9, %c0_10, %c0_11], %14 {strides = array<i32>} : memref<1x24x256xf32, #tpu.memory_space<vmem>>, vector<1x24x256xf32>,
    return
  }
  func.func @transform_0(%arg0: i32, %arg1: i32) -> (i32, i32, i32) {
    %c0_i32 = arith.constant 0 : i32
    %c0_i32_0 = arith.constant 0 : i32
    return %arg0, %c0_i32, %arg1 : i32, i32, i32
  }
  func.func @transform_1(%arg0: i32, %arg1: i32) -> (i32, i32) {
    %c0_i32 = arith.constant 0 : i32
    %c0_i32_0 = arith.constant 0 : i32
    %c0_i32_1 = arith.constant 0 : i32
    return %c0_i32, %c0_i32_0 : i32, i32
  }
  func.func @transform_2(%arg0: i32, %arg1: i32) -> (i32, i32) {
    %c0_i32 = arith.constant 0 : i32
    %c0_i32_0 = arith.constant 0 : i32
    %c0_i32_1 = arith.constant 0 : i32
    return %c0_i32, %c0_i32_0 : i32, i32
  }
  func.func @transform_3(%arg0: i32, %arg1: i32) -> (i32, i32) {
    %c0_i32 = arith.constant 0 : i32
    %c0_i32_0 = arith.constant 0 : i32
    %c0_i32_1 = arith.constant 0 : i32
    return %c0_i32, %c0_i32_0 : i32, i32
  }
  func.func @transform_4(%arg0: i32, %arg1: i32) -> (i32, i32, i32) {
    %c0_i32 = arith.constant 0 : i32
    %c0_i32_0 = arith.constant 0 : i32
    return %arg0, %c0_i32, %arg1 : i32, i32, i32
  }
}

</mosaic_0001>

<bundles_post_ra>
// kernel: mnasnet_block.3
= control target key start
LH: loop header
LB: loop body
LE: loop exit
PB: predicated region body
PF: predicated region fallthrough
CT: control target
= control target key end

     0   :  { %s725_s15 = smov 0   ;;  %s727_s16 = smov 0   ;;  %s852_s0 = inlined_call_operand.vmem [shape: f32[2,72,256], index: 0, kind: input, shape index: {}]   ;;  %s853_s1 = inlined_call_operand.vmem [shape: f32[72,1], index: 1, kind: input, shape index: {}]   ;;  %s854_s2 = inlined_call_operand.vmem [shape: f32[72,1], index: 2, kind: input, shape index: {}]   ;;  %s855_s3 = inlined_call_operand.vmem [shape: f32[24,72], index: 3, kind: input, shape index: {}]   ;;  %s856_s4 = inlined_call_operand.vmem [shape: f32[2,24,256], index: 4, kind: output, shape index: {}]  }
   0x1   :  { %s729_s17 = smov 0  }
   0x2 LB: > { %s26_s18 = sadd.s32 1, %s692_s16  ;;  %p610_p0 = scmp.ge.s32.totalorder %s696_s17, 1  ;;  %s696_s17 = sphi %s729_s17, %s14_s17   ;;  %s692_s16 = sphi %s727_s16, %s858_s16   ;;  %s688_s15 = sphi %s725_s15, %s857_s15  }
   0x3   : > { %p28_p1 = scmp.ge.s32.totalorder %s26_s18, 2  ;;  %p183_p2 = scmp.lt.s32.totalorder %s696_s17, 3 }
   0x5   : > { %s860_s18 = smov (%p28_p1, %s26_s18), 0  ;;  %p184_p3 = pnand %p610_p0, %p183_p2 }
   0x6   : > { %v327_v0 = vld [vmem:[%s854_s2] sm:$0xff] (!%p184_p3)  ;;  %v698_v2 = vmov (!%p184_p3), 0   ;;  %v328_v3 = vld [vmem:[%s854_s2 + $0x8] sm:$0xff] (!%p184_p3)  ;;  %v258_v5 = vld [vmem:[%s853_s1 + $0x18] sm:$0xff] (!%p184_p3)  ;;  %v699_v19 = vmov (!%p184_p3), 0.0   ;;  %p218_p4 = scmp.lt.s32.totalorder (!%p184_p3), %s688_s15, 1 }
   0x7   : > { %187 = sbr.rel (%p184_p3) target bundleno = 394 (0x18a), region = 36  ;;  %v255_v1 = vld [vmem:[%s853_s1] sm:$0xff] (!%p184_p3)  ;;  %673 = vset.pattern.permute.xlu1 (!%p184_p3), %v698_v2  ;;  %672 = vset.pattern.permute.xlu0 (!%p184_p3), %v698_v2  ;;  %v256_v4 = vld [vmem:[%s853_s1 + $0x8] sm:$0xff] (!%p184_p3)  ;;  %v257_v6 = vld [vmem:[%s853_s1 + $0x10] sm:$0xff] (!%p184_p3)  ;;  %vm420_vm0 = vcmask (!%p184_p3), 588800  }
   0x8   : > { %338 = vperm.xlu1 (!%p184_p3), %673, %v327_v0   ;;  %266 = vperm.xlu0 (!%p184_p3), %672, %v255_v1   ;;  %v330_v7 = vld [vmem:[%s854_s2 + $0x18] sm:$0xff] (!%p184_p3)  ;;  %v329_v8 = vld [vmem:[%s854_s2 + $0x10] sm:$0xff] (!%p184_p3)  ;;  %v260_v9 = vld [vmem:[%s853_s1 + $0x28] sm:$0xff] (!%p184_p3) }
   0x9   : > { %v259_v10 = vld [vmem:[%s853_s1 + $0x20] sm:$0xff] (!%p184_p3)  ;;  %v332_v11 = vld [vmem:[%s854_s2 + $0x28] sm:$0xff] (!%p184_p3)  ;;  %v262_v13 = vld [vmem:[%s853_s1 + $0x38] sm:$0xff] (!%p184_p3)  ;;  %500 = vmatprep.mubr.f32.mxu1 (!%p184_p3), %v699_v19  ;;  %494 = vmatprep.mubr.f32.mxu0 (!%p184_p3), %v699_v19 }
   0xa   : > { %v331_v12 = vld [vmem:[%s854_s2 + $0x20] sm:$0xff] (!%p184_p3)  ;;  %v261_v14 = vld [vmem:[%s853_s1 + $0x30] sm:$0xff] (!%p184_p3)  ;;  %v334_v15 = vld [vmem:[%s854_s2 + $0x38] sm:$0xff] (!%p184_p3) }
   0xb   : > { %v333_v16 = vld [vmem:[%s854_s2 + $0x30] sm:$0xff] (!%p184_p3)  ;;  %v335_v17 = vld [vmem:[%s854_s2 + $0x40] sm:$0xff] (!%p184_p3) }
   0xc   : > { %343 = vperm.xlu1 (!%p184_p3), %673, %v328_v3   ;;  %271 = vperm.xlu0 (!%p184_p3), %672, %v256_v4   ;;  %v263_v18 = vld [vmem:[%s853_s1 + $0x40] sm:$0xff] (!%p184_p3) }
   0xe   : > { %s862_s15 = smov (!%p218_p4, %s688_s15), 1 }
   0xf   : > { %s644_s7 = smul.u32 144, %s862_s15 }
  0x10   : > { %281 = vperm.xlu1 %673, %v258_v5   ;;  %276 = vperm.xlu0 %672, %v257_v6   ;;  %s645_s21 = smul.u32 48, %s862_s15 }
  0x11   : > { %s809_s10 = scalar_lea.vmem %s852_s0, %s644_s7 }
  0x12   : > { %v237_v20 = vld [vmem:[%s809_s10] sm:$0xff]  ;;  %v238_v21 = vld [vmem:[%s809_s10 + $0x8] sm:$0xff]  ;;  %v239_v26 = vld [vmem:[%s809_s10 + $0x10] sm:$0xff]  ;;  %s235_s24 = scalar_lea.vmem %s856_s4, %s645_s21 }
  0x13   : > { %v240_v27 = vld [vmem:[%s809_s10 + $0x18] sm:$0xff]  ;;  %v243_v36 = vld [vmem:[%s809_s10 + $0x30] sm:$0xff]  ;;  %v241_v40 = vld [vmem:[%s809_s10 + $0x20] sm:$0xff] }
  0x14   : > { %353 = vperm.xlu1 %673, %v330_v7   ;;  %348 = vperm.xlu0 %672, %v329_v8   ;;  %v244_v38 = vld [vmem:[%s809_s10 + $0x38] sm:$0xff]  ;;  %v242_v41 = vld [vmem:[%s809_s10 + $0x28] sm:$0xff]  ;;  %v247_v62 = vld [vmem:[%s809_s10 + $0x50] sm:$0xff] }
  0x15   : > { %v248_v0 = vld [vmem:[%s809_s10 + $0x58] sm:$0xff]  ;;  %v245_v2 = vld [vmem:[%s809_s10 + $0x40] sm:$0xff]  ;;  %v246_v3 = vld [vmem:[%s809_s10 + $0x48] sm:$0xff] }
  0x18   : > { %291 = vperm.xlu1 %673, %v260_v9   ;;  %286 = vperm.xlu0 %672, %v259_v10  }
  0x1c   : > { %363 = vperm.xlu1 %673, %v332_v11   ;;  %358 = vperm.xlu0 %672, %v331_v12  }
  0x20   : > { %301 = vperm.xlu1 %673, %v262_v13   ;;  %296 = vperm.xlu0 %672, %v261_v14  }
  0x24   : > { %373 = vperm.xlu1 %673, %v334_v15   ;;  %368 = vperm.xlu0 %672, %v333_v16  }
  0x28   : > { %378 = vperm.xlu1 %673, %v335_v17   ;;  %306 = vperm.xlu0 %672, %v263_v18  }
  0x87   : > { %v339_v22 = vpop.permute.xlu1 %338  ;;  %v267_v23 = vpop.permute.xlu0 %266 }
  0x88   : > { %v309_v24 = vmul.f32 %v267_v23, %v237_v20  ;;  %v310_v25 = vmul.f32 %v267_v23, %v238_v21  ;;  %v251_v21 = vld [vmem:[%s809_s10 + $0x70] sm:$0xff]  ;;  %v252_v23 = vld [vmem:[%s809_s10 + $0x78] sm:$0xff] }
  0x8a   : > { %v381_v32 = vadd.f32 %v339_v22, %v309_v24  ;;  %v382_v33 = vadd.f32 %v339_v22, %v310_v25  ;;  %v249_v25 = vld [vmem:[%s809_s10 + $0x60] sm:$0xff] }
  0x8b   : > { %v344_v28 = vpop.permute.xlu1 %343  ;;  %v272_v29 = vpop.permute.xlu0 %271 }
  0x8c   : > { %v311_v30 = vmul.f32 %v272_v29, %v239_v26  ;;  %v312_v31 = vmul.f32 %v272_v29, %v240_v27  ;;  %v400_v42 = vmax.f32 %v382_v33, 0.0  ;;  %v399_v44 = vmax.f32 %v381_v32, 0.0  ;;  %v250_v26 = vld [vmem:[%s809_s10 + $0x68] sm:$0xff] }
  0x8e   : > { %v383_v34 = vadd.f32 %v344_v28, %v311_v30  ;;  %v384_v35 = vadd.f32 %v344_v28, %v312_v31 }
  0x8f   : > { %v282_v37 = vpop.permute.xlu1 %281  ;;  %v277_v39 = vpop.permute.xlu0 %276 }
  0x90   : > { %v402_v43 = vmax.f32 %v384_v35, 0.0  ;;  %v401_v45 = vmax.f32 %v383_v34, 0.0  ;;  %v315_v46 = vmul.f32 %v282_v37, %v243_v36  ;;  %v316_v47 = vmul.f32 %v282_v37, %v244_v38 }
  0x91   : > { %v313_v48 = vmul.f32 %v277_v39, %v241_v40  ;;  %v314_v49 = vmul.f32 %v277_v39, %v242_v41  ;;  %v253_v39 = vld [vmem:[%s809_s10 + $0x80] sm:$0xff]  ;;  %v254_v40 = vld [vmem:[%s809_s10 + $0x88] sm:$0xff] }
  0x92   : > { %v618_v52 = vpack.c.bf16 %v402_v43, %v400_v42  ;;  %v620_v53 = vpack.c.bf16 %v401_v45, %v399_v44 }
  0x93   : > { %v354_v50 = vpop.permute.xlu1 %353  ;;  %v349_v51 = vpop.permute.xlu0 %348 }
  0x94   : > { %v387_v54 = vadd.f32 %v354_v50, %v315_v46  ;;  %v388_v55 = vadd.f32 %v354_v50, %v316_v47  ;;  %v385_v56 = vadd.f32 %v349_v51, %v313_v48  ;;  %v386_v57 = vadd.f32 %v349_v51, %v314_v49  ;;  %619 = vmatprep.subr.bf16.mxu0 %v618_v52 }
  0x95   : > { %634 = vmatprep.subr.bf16.mxu1 %v618_v52  ;;  %621 = vmatpush1.bf16.msra.mxu0 %v620_v53 }
  0x96   : > { %v405_v58 = vmax.f32 %v387_v54, 0.0  ;;  %v406_v59 = vmax.f32 %v388_v55, 0.0  ;;  %v403_v60 = vmax.f32 %v385_v56, 0.0  ;;  %v404_v61 = vmax.f32 %v386_v57, 0.0  ;;  %639 = vmatpush1.bf16.msra.mxu1 %v620_v53  ;;  %v418_v55 = vld [vmem:[%s855_s3 + $0x8] sm:$0xff]  ;;  %v417_v56 = vld [vmem:[%s855_s3] sm:$0xff] }
  0x97   : > { %v292_v63 = vpop.permute.xlu1 %291  ;;  %v287_v1 = vpop.permute.xlu0 %286  ;;  %v419_v57 = vld [vmem:[%s855_s3 + $0x10] sm:$0xff] }
  0x98   : > { %v622_v4 = vpack.c.bf16 %v406_v59, %v404_v61  ;;  %v624_v5 = vpack.c.bf16 %v405_v58, %v403_v60  ;;  %v319_v6 = vmul.f32 %v292_v63, %v247_v62  ;;  %v320_v7 = vmul.f32 %v292_v63, %v248_v0 }
  0x99   : > { %v317_v8 = vmul.f32 %v287_v1, %v245_v2  ;;  %v318_v9 = vmul.f32 %v287_v1, %v246_v3 }
  0x9a   : > { %623 = vmatprep.subr.bf16.mxu0 %v622_v4  ;;  %635 = vmatprep.subr.bf16.mxu1 %v622_v4 }
  0x9b   : > { %v364_v10 = vpop.permute.xlu1 %363  ;;  %v359_v11 = vpop.permute.xlu0 %358  ;;  %625 = vmatpush1.bf16.msra.mxu0 %v624_v5  ;;  %640 = vmatpush1.bf16.msra.mxu1 %v624_v5 }
  0x9c   : > { %v391_v12 = vadd.f32 %v364_v10, %v319_v6  ;;  %v392_v13 = vadd.f32 %v364_v10, %v320_v7  ;;  %v389_v14 = vadd.f32 %v359_v11, %v317_v8  ;;  %v390_v15 = vadd.f32 %v359_v11, %v318_v9 }
  0x9e   : > { %v409_v16 = vmax.f32 %v391_v12, 0.0  ;;  %v410_v17 = vmax.f32 %v392_v13, 0.0  ;;  %v407_v18 = vmax.f32 %v389_v14, 0.0  ;;  %v408_v20 = vmax.f32 %v390_v15, 0.0 }
  0x9f   : > { %v302_v22 = vpop.permute.xlu1 %301  ;;  %v297_v24 = vpop.permute.xlu0 %296 }
  0xa0   : > { %v626_v27 = vpack.c.bf16 %v410_v17, %v408_v20  ;;  %v628_v28 = vpack.c.bf16 %v409_v16, %v407_v18  ;;  %v323_v29 = vmul.f32 %v302_v22, %v251_v21  ;;  %v324_v30 = vmul.f32 %v302_v22, %v252_v23 }
  0xa1   : > { %v321_v31 = vmul.f32 %v297_v24, %v249_v25  ;;  %v322_v32 = vmul.f32 %v297_v24, %v250_v26 }
  0xa2   : > { %627 = vmatprep.subr.bf16.mxu0 %v626_v27  ;;  %636 = vmatprep.subr.bf16.mxu1 %v626_v27 }
  0xa3   : > { %v374_v33 = vpop.permute.xlu1 %373  ;;  %v369_v34 = vpop.permute.xlu0 %368  ;;  %629 = vmatpush1.bf16.msra.mxu0 %v628_v28  ;;  %641 = vmatpush1.bf16.msra.mxu1 %v628_v28 }
  0xa4   : > { %v395_v35 = vadd.f32 %v374_v33, %v323_v29  ;;  %v396_v36 = vadd.f32 %v374_v33, %v324_v30  ;;  %v393_v37 = vadd.f32 %v369_v34, %v321_v31  ;;  %v394_v38 = vadd.f32 %v369_v34, %v322_v32 }
  0xa6   : > { %v413_v41 = vmax.f32 %v395_v35, 0.0  ;;  %v414_v42 = vmax.f32 %v396_v36, 0.0  ;;  %v411_v43 = vmax.f32 %v393_v37, 0.0  ;;  %v412_v44 = vmax.f32 %v394_v38, 0.0 }
  0xa7   : > { %v307_v45 = vpop.permute.xlu0 %306  ;;  %v379_v50 = vpop.permute.xlu1 %378 }
  0xa8   : > { %v325_v46 = vmul.f32 %v307_v45, %v253_v39  ;;  %v326_v47 = vmul.f32 %v307_v45, %v254_v40  ;;  %v630_v48 = vpack.c.bf16 %v414_v42, %v412_v44  ;;  %v632_v49 = vpack.c.bf16 %v413_v41, %v411_v43 }
  0xaa   : > { %v397_v51 = vadd.f32 %v379_v50, %v325_v46  ;;  %v398_v52 = vadd.f32 %v379_v50, %v326_v47  ;;  %631 = vmatprep.subr.bf16.mxu0 %v630_v48  ;;  %637 = vmatprep.subr.bf16.mxu1 %v630_v48 }
  0xab   : > { %633 = vmatpush1.bf16.msra.mxu0 %v632_v49  ;;  %642 = vmatpush1.bf16.msra.mxu1 %v632_v49 }
  0xac   : > { %v415_v53 = vmax.f32 %v397_v51, 0.0  ;;  %v416_v54 = vmax.f32 %v398_v52, 0.0 }
  0xae   : > { %446 = vmatprep.subr.mxu0 %v416_v54  ;;  %638 = vmatprep.subr.mxu1 %v416_v54 }
  0xaf   : > { %447 = vmatpush1.msra.mxu0 %v415_v53  ;;  %643 = vmatpush1.msra.mxu1 %v415_v53 }
  0xb0   : > { %614 = vmatmul.mubr.msk.f32.vlgmr.msra.gmra.mrb[0].mxu1 %vm420_vm0, %v418_v55  ;;  %613 = vmatmul.mubr.msk.f32.vlgmr.msra.gmra.mrb[0].mxu0 %vm420_vm0, %v417_v56 }
  0xb1   : > { %506 = vmatprep.mubr.f32.mxu1 %v699_v19 }
  0xb4   : > { %615 = vmatmul.mubr.msk.f32.gmra.mrb[2].mxu1 %vm420_vm0, %v419_v57 }
 0x183   : > { %v502_v58 = vpop.f32.mrb[0].mxu1  ;;  %v496_v59 = vpop.f32.mrb[0].mxu0 }
 0x184   : > { %515 = vst [vmem:[%s235_s24 + $0x10] sm:$0xff] %v502_v58  ;;  %v504_v60 = vpop.f32.mrb[1].mxu1  ;;  %513 = vst [vmem:[%s235_s24] sm:$0xff] %v496_v59  ;;  %v498_v61 = vpop.f32.mrb[1].mxu0 }
 0x185   : > { %516 = vst [vmem:[%s235_s24 + $0x18] sm:$0xff] %v504_v60  ;;  %514 = vst [vmem:[%s235_s24 + $0x8] sm:$0xff] %v498_v61 }
 0x187   : > { %v508_v62 = vpop.f32.mrb[2].mxu1 }
 0x188   : > { %517 = vst [vmem:[%s235_s24 + $0x20] sm:$0xff] %v508_v62  ;;  %v510_v19 = vpop.f32.mrb[3].mxu1 }
 0x189   : > { %518 = vst [vmem:[%s235_s24 + $0x28] sm:$0xff] %v510_v19 }
 0x18a PF: > { %s14_s17 = sadd.s32 1, %s696_s17   ;;  %s857_s15 = smov %s692_s16 }
 0x18b   : > { %p11_p5 = scmp.ge.s32.totalorder %s14_s17, 4   ;;  %s858_s16 = smov %s860_s18 }
 0x18d   :  { %13 = sbr.rel (!%p11_p5) target bundleno = 2 (0x2), region = 66 }

// kernel: mnasnet_block.2
= control target key start
LH: loop header
LB: loop body
LE: loop exit
PB: predicated region body
PF: predicated region fallthrough
CT: control target
= control target key end

     0   :  { %s1050_s15 = smov 0   ;;  %s1052_s16 = smov 0   ;;  %s1437_s0 = inlined_call_operand.vmem [shape: f32[2,72,256], index: 0, kind: input, shape index: {}]   ;;  %s1438_s1 = inlined_call_operand.vmem [shape: f32[72,9], index: 1, kind: input, shape index: {}]   ;;  %s1439_s2 = inlined_call_operand.vmem [shape: f32[4,256], index: 2, kind: input, shape index: {}]   ;;  %s1440_s3 = inlined_call_operand.vmem [shape: f32[2,72,256], index: 3, kind: output, shape index: {0}]   ;;  %s1441_s4 = inlined_call_operand.vmem [shape: f32[2,72,2], index: 4, kind: output, shape index: {1}]  }
   0x1   :  { %s1054_s17 = smov 0   ;;  %s1056_s18 = smov 0  }
   0x2   :  { %s1058_s19 = smov 0  }
   0x3 LB: > { %s24_s20 = sadd.s32 1, %s1002_s17  ;;  %s27_s21 = sadd.s32 1, %s1006_s18  ;;  %s1010_s19 = sphi %s1058_s19, %s15_s19   ;;  %s1006_s18 = sphi %s1056_s18, %s1449_s18   ;;  %s1002_s17 = sphi %s1054_s17, %s1448_s17   ;;  %s998_s16 = sphi %s1052_s16, %s1447_s16   ;;  %s994_s15 = sphi %s1050_s15, %s1446_s15  }
   0x4   : > { %p25_p0 = scmp.ge.s32.totalorder %s24_s20, 3  ;;  %p889_p1 = scmp.ge.s32.totalorder %s1010_s19, 1 }
   0x5   : > { %p200_p2 = scmp.lt.s32.totalorder %s1010_s19, 7 }
   0x6   : > { %s1451_s20 = smov (%p25_p0, %s24_s20), 0  ;;  %s1453_s21 = smov (!%p25_p0, %s27_s21), %s1006_s18 }
   0x7   : > { %p201_p3 = pnand %p889_p1, %p200_p2  ;;  %p29_p4 = scmp.ge.s32.totalorder %s1453_s21, 2 }
   0x9   : > { %s1455_s21 = smov (%p29_p4, %s1453_s21), 0  ;;  %204 = sbr.rel (%p201_p3) target bundleno = 517 (0x205), region = 32 }
  0x10   : > { %s250_s22 = smul.u32 3, %s994_s15  ;;  %v1012_v0 = vmov 0   ;;  %v1013_v4 = vmov 1   ;;  %p251_p6 = scmp.lt.s32.totalorder %s998_s16, 1  ;;  %v1014_v5 = vmov 2   ;;  %v1015_v6 = vmov 6  }
  0x11   : > { %954 = vset.pattern.permute.xlu1 %v1012_v0  ;;  %953 = vset.pattern.permute.xlu0 %v1012_v0  ;;  %v1016_v7 = vmov 7   ;;  %s1017_s8 = smov 1   ;;  %v1018_v10 = vmov 8   ;;  %s1019_s9 = smov 127   ;;  %v1020_v15 = vmov 3   ;;  %v1021_v16 = vmov 4  }
  0x12   : > { %p253_p5 = scmp.lt.s32.totalorder %s250_s22, 8  ;;  %s1459_s16 = smov (!%p251_p6, %s998_s16), 1  ;;  %v1022_v17 = vmov 5   ;;  %v310_v32 = vlaneseq  ;;  %v1195_v39 = vld [vmem:[%s1439_s2] sm:$0xff]  ;;  %vm716_vm4 = vcmask 7168   ;;  %vm720_vm5 = vcmask 15360  }
  0x13   : > { %s898_s27 = smul.u32 18, %s1459_s16  ;;  %1444 = vst [vmem:[#allocation2_spill] sm:$0xff] %v1195_v39  ;;  %s1023_s12 = smov 14  }
  0x14   : > { %s1457_s22 = smov (!%p253_p5, %s250_s22), 8  ;;  %v1187_v35 = vshrl.u32 %v310_v32, 7  ;;  %v1199_v41 = vand.u32 127, %v310_v32  ;;  %s1024_s13 = smov 114  }
  0x15   : > { %s892_s23 = sshll.u32 %s1457_s22, 3  ;;  %s890_s28 = sshll.u32 %s1457_s22, 1 }
  0x16   : > { %s265_s26 = scalar_lea.vmem %s1438_s1, %s892_s23  ;;  %s1108_s29 = sadd.s32 %s898_s27, %s890_s28  ;;  %v326_v38 = vsub.s32 6, %v1187_v35  ;;  %v322_v44 = vsub.s32 2, %v1187_v35  ;;  %vm312_vm0 = vcmp.lt.s32.totalorder %v1199_v41, 1  ;;  %v410_v55 = vsub.s32 3, %v1187_v35 }
  0x17   : > { %v1088_v1 = vld [vmem:[%s265_s26 + $0x10] sm:$0xff]  ;;  %v1090_v2 = vld [vmem:[%s265_s26] sm:$0xff]  ;;  %v1094_v3 = vld [vmem:[%s265_s26 + $0x8] sm:$0xff]  ;;  %s891_s30 = sshll.u32 %s1108_s29, 3  ;;  %v414_v62 = vsub.s32 7, %v1187_v35  ;;  %vm401_vm1 = vcmp.lt.s32.totalorder %v1199_v41, 127 }
  0x18   : > { %356 = vperm.xlu1 %954, %v1088_v1   ;;  %346 = vperm.xlu0 %953, %v1090_v2   ;;  %s259_s7 = scalar_lea.vmem %s1437_s0, %s891_s30  ;;  %v327_v42 = vrot.slane %v1195_v39, %v326_v38  ;;  %v323_v51 = vrot.slane %v1195_v39, %v322_v44  ;;  %v411_v61 = vrot.slane %v1195_v39, %v410_v55  ;;  %vm468_vm2 = vcmp.lt.s32.totalorder %v1199_v41, 14  ;;  %s1400_s23 = scalar_lea.vmem %s1440_s3, %s891_s30 }
  0x19   : > { %v1120_v8 = vld [vmem:[%s259_s7 + $0x10] sm:$0xff]  ;;  %v1124_v9 = vld [vmem:[%s259_s7 + $0x8] sm:$0xff]  ;;  %v1132_v12 = vld [vmem:[%s259_s7] sm:$0xff]  ;;  %vm649_vm3 = vcmp.lt.s32.totalorder %v1199_v41, 114  ;;  %s899_s24 = smul.u32 9, %s1459_s16 }
  0x1a   : > { %v1128_v11 = vld [vmem:[%s259_s7 + $0x28] sm:$0xff]  ;;  %v1136_v13 = vld [vmem:[%s259_s7 + $0x20] sm:$0xff]  ;;  %v1140_v14 = vld [vmem:[%s259_s7 + $0x18] sm:$0xff]  ;;  %v337_v45 = vrot.slane %v327_v42, %v322_v44  ;;  %v333_v57 = vrot.slane %v323_v51, %v322_v44 }
  0x1b   : > { %s284_s25 = sadd.s32 %s899_s24, %s1457_s22 }
  0x1c   : > { %955 = vset.pattern.permute.xlu1 %v1013_v4  ;;  %351 = vperm.xlu0 %953, %v1094_v3   ;;  %s895_s26 = sshll.u32 %s284_s25, 3 }
  0x1d   : > { %366 = vperm.xlu1 %955, %v1090_v2   ;;  %s286_s29 = scalar_lea.vmem %s1441_s4, %s895_s26 }
  0x20   : > { %956 = vset.pattern.permute.xlu0 %v1013_v4 }
  0x21   : > { %374 = vperm.xlu1 %955, %v1088_v1   ;;  %370 = vperm.xlu0 %956, %v1094_v3  }
  0x25   : > { %957 = vset.pattern.permute.xlu1 %v1014_v5  ;;  %958 = vset.pattern.permute.xlu0 %v1014_v5  ;;  %v415_v5 = vrot.slane %v1195_v39, %v414_v62 }
  0x26   : > { %433 = vperm.xlu1 %957, %v1090_v2   ;;  %437 = vperm.xlu0 %958, %v1094_v3  }
  0x2a   : > { %441 = vperm.xlu1 %957, %v1088_v1   ;;  %960 = vset.pattern.permute.xlu0 %v1015_v6 }
  0x2b   : > { %576 = vperm.xlu0 %960, %v1094_v3  }
  0x2e   : > { %959 = vset.pattern.permute.xlu1 %v1015_v6 }
  0x2f   : > { %572 = vperm.xlu1 %959, %v1090_v2   ;;  %962 = vset.pattern.permute.xlu0 %v1016_v7 }
  0x30   : > { %594 = vperm.xlu0 %962, %v1094_v3  }
  0x33   : > { %580 = vperm.xlu1 %959, %v1088_v1  }
  0x34   : > { %300 = vrot.lane.b32.xlu0 %v1120_v8, %s1017_s8 }
  0x35   : > { %964 = vset.pattern.permute.xlu0 %v1018_v10 }
  0x37   : > { %961 = vset.pattern.permute.xlu1 %v1016_v7 }
  0x38   : > { %590 = vperm.xlu1 %961, %v1090_v2   ;;  %304 = vrot.lane.b32.xlu0 %v1124_v9, %s1017_s8 }
  0x3c   : > { %598 = vperm.xlu1 %961, %v1088_v1   ;;  %308 = vrot.lane.b32.xlu0 %v1128_v11, %s1017_s8 }
  0x40   : > { %618 = vperm.xlu0 %964, %v1094_v3   ;;  %298 = vrot.lane.b32.xlu1 %v1132_v12, %s1017_s8 }
  0x41   : > { %963 = vset.pattern.permute.xlu1 %v1018_v10 }
  0x44   : > { %391 = vrot.lane.b32.xlu0 %v1120_v8, %s1019_s9  ;;  %302 = vrot.lane.b32.xlu1 %v1136_v13, %s1017_s8 }
  0x45   : > { %966 = vset.pattern.permute.xlu0 %v1020_v15 }
  0x48   : > { %395 = vrot.lane.b32.xlu0 %v1124_v9, %s1019_s9  ;;  %306 = vrot.lane.b32.xlu1 %v1140_v14, %s1017_s8 }
  0x4c   : > { %399 = vrot.lane.b32.xlu0 %v1128_v11, %s1019_s9  ;;  %614 = vperm.xlu1 %963, %v1090_v2  }
  0x50   : > { %504 = vperm.xlu0 %966, %v1094_v3   ;;  %622 = vperm.xlu1 %963, %v1088_v1  }
  0x54   : > { %968 = vset.pattern.permute.xlu0 %v1021_v16  ;;  %389 = vrot.lane.b32.xlu1 %v1132_v12, %s1019_s9 }
  0x55   : > { %522 = vperm.xlu0 %968, %v1094_v3   ;;  %965 = vset.pattern.permute.xlu1 %v1020_v15 }
  0x58   : > { %393 = vrot.lane.b32.xlu1 %v1136_v13, %s1019_s9 }
  0x59   : > { %970 = vset.pattern.permute.xlu0 %v1022_v17 }
  0x5a   : > { %546 = vperm.xlu0 %970, %v1094_v3   ;;  %v421_v3 = vrot.slane %v411_v61, %v410_v55 }
  0x5c   : > { %397 = vrot.lane.b32.xlu1 %v1140_v14, %s1019_s9 }
  0x5e   : > { %971 = vset.pattern.permute.xlu0 %v1018_v10 }
  0x60   : > { %500 = vperm.xlu1 %965, %v1090_v2  }
  0x64   : > { %508 = vperm.xlu1 %965, %v1088_v1  }
  0x68   : > { %967 = vset.pattern.permute.xlu1 %v1021_v16 }
  0x69   : > { %518 = vperm.xlu1 %967, %v1090_v2  }
  0x6d   : > { %526 = vperm.xlu1 %967, %v1088_v1  }
  0x71   : > { %969 = vset.pattern.permute.xlu1 %v1022_v17 }
  0x72   : > { %542 = vperm.xlu1 %969, %v1090_v2  }
  0x76   : > { %550 = vperm.xlu1 %969, %v1088_v1  }
  0x97   : > { %v1159_v18 = vpop.permute.xlu1 %356  ;;  %v1161_v19 = vpop.permute.xlu0 %346 }
  0x9b   : > { %v1163_v20 = vpop.permute.xlu0 %351 }
  0x9c   : > { %v1165_v21 = vpop.permute.xlu1 %366 }
  0x9d   : > { %v377_v32 = vmul.f32 %v1165_v21, %v1132_v12  ;;  %v378_v44 = vmul.f32 %v1165_v21, %v1124_v9 }
  0xa0   : > { %v1167_v22 = vpop.permute.xlu1 %374  ;;  %v1169_v23 = vpop.permute.xlu0 %370 }
  0xa1   : > { %v382_v50 = vmul.f32 %v1167_v22, %v1128_v11 }
  0xa5   : > { %v1171_v24 = vpop.permute.xlu1 %433  ;;  %v1173_v25 = vpop.permute.xlu0 %437 }
  0xa9   : > { %v1175_v26 = vpop.permute.xlu1 %441 }
  0xaa   : > { %v1177_v27 = vpop.permute.xlu0 %576 }
  0xae   : > { %v1179_v28 = vpop.permute.xlu1 %572 }
  0xaf   : > { %v1181_v29 = vpop.permute.xlu0 %594 }
  0xb2   : > { %v1183_v30 = vpop.permute.xlu1 %580 }
  0xb3   : > { %v301_v31 = vpop.permute.xlu0 %300 }
  0xb7   : > { %v1185_v33 = vpop.permute.xlu1 %590  ;;  %v305_v34 = vpop.permute.xlu0 %304 }
  0xbb   : > { %v1189_v36 = vpop.permute.xlu1 %598  ;;  %v309_v37 = vpop.permute.xlu0 %308 }
  0xbf   : > { %v1197_v40 = vpop.permute.xlu0 %618  ;;  %v299_v43 = vpop.permute.xlu1 %298 }
  0xc0   : > { %v316_v60 = vsel %vm312_vm0, %v305_v34, %v299_v43  ;;  %v313_v4 = vsel %vm312_vm0, %v299_v43, %v305_v34  ;;  %v425_v43 = vrot.slane %v415_v5, %v410_v55 }
  0xc1   : > { %v1224_v63 = vmul.f32 %v333_v57, %v316_v60  ;;  %v1246_v34 = vmul.f32 %v337_v45, %v313_v4 }
  0xc3   : > { %v1204_v46 = vpop.permute.xlu0 %391  ;;  %v303_v47 = vpop.permute.xlu1 %302  ;;  %v359_v6 = vmul.f32 %v1161_v19, %v1224_v63 }
  0xc4   : > { %v315_v48 = vsel %vm312_vm0, %v303_v47, %v309_v37  ;;  %v318_v1 = vsel %vm312_vm0, %v309_v37, %v303_v47 }
  0xc5   : > { %v1208_v49 = vmul.f32 %v337_v45, %v315_v48  ;;  %v1236_v7 = vmul.f32 %v333_v57, %v318_v1  ;;  %v583_v1 = vmul.f32 %v1179_v28, %v1224_v63 }
  0xc7   : > { %v364_v52 = vmul.f32 %v1159_v18, %v1208_v49  ;;  %v396_v53 = vpop.permute.xlu0 %395  ;;  %v307_v54 = vpop.permute.xlu1 %306 }
  0xc8   : > { %v314_v10 = vsel %vm312_vm0, %v301_v31, %v307_v54  ;;  %v317_v15 = vsel %vm312_vm0, %v307_v54, %v301_v31  ;;  %v363_v31 = vmul.f32 %v1159_v18, %v1236_v7  ;;  %v380_v54 = vmul.f32 %v1169_v23, %v1140_v14 }
  0xc9   : > { %v1216_v56 = vadd.f32 %v382_v50, %v364_v52  ;;  %v1250_v38 = vmul.f32 %v333_v57, %v317_v15  ;;  %v1252_v42 = vmul.f32 %v337_v45, %v314_v10  ;;  %v383_v50 = vadd.f32 %v377_v32, %v359_v6 }
  0xca   : > { %v381_v52 = vmul.f32 %v1167_v22, %v1136_v13  ;;  %v379_v45 = vmul.f32 %v1169_v23, %v1120_v8  ;;  %v360_v18 = vmul.f32 %v1161_v19, %v1246_v34 }
  0xcb   : > { %v400_v58 = vpop.permute.xlu0 %399  ;;  %v1218_v59 = vpop.permute.xlu1 %614  ;;  %v361_v22 = vmul.f32 %v1163_v20, %v1250_v38  ;;  %v362_v61 = vmul.f32 %v1163_v20, %v1252_v42 }
  0xcf   : > { %v1226_v0 = vpop.permute.xlu1 %622  ;;  %v505_v2 = vpop.permute.xlu0 %504 }
  0xd0   : > { %v513_v19 = vmul.f32 %v505_v2, %v1250_v38  ;;  %v514_v6 = vmul.f32 %v505_v2, %v1252_v42  ;;  %v385_v2 = vadd.f32 %v379_v45, %v361_v22 }
  0xd3   : > { %v390_v16 = vpop.permute.xlu1 %389 }
  0xd4   : > { %v402_v17 = vsel %vm401_vm1, %v390_v16, %v396_v53  ;;  %v523_v47 = vpop.permute.xlu0 %522  ;;  %v405_v55 = vsel %vm401_vm1, %v396_v53, %v390_v16  ;;  %v387_v53 = vadd.f32 %v381_v52, %v363_v31  ;;  %v386_v52 = vadd.f32 %v380_v54, %v362_v61 }
  0xd5   : > { %v1248_v37 = vmul.f32 %v421_v3, %v402_v17  ;;  %v531_v23 = vmul.f32 %v523_v47, %v1120_v8  ;;  %v532_v62 = vmul.f32 %v523_v47, %v1140_v14  ;;  %v1287_v20 = vmul.f32 %v425_v43, %v405_v55 }
  0xd7   : > { %v394_v48 = vpop.permute.xlu1 %393  ;;  %v444_v51 = vmul.f32 %v1171_v24, %v1248_v37 }
  0xd8   : > { %v404_v21 = vsel %vm401_vm1, %v394_v48, %v400_v58  ;;  %v407_v17 = vsel %vm401_vm1, %v400_v58, %v394_v48  ;;  %v625_v48 = vmul.f32 %v1218_v59, %v1248_v37 }
  0xd9   : > { %v1272_v57 = vmul.f32 %v421_v3, %v404_v21  ;;  %v450_v60 = vadd.f32 %v444_v51, %v383_v50  ;;  %v547_v16 = vpop.permute.xlu0 %546  ;;  %v537_v50 = vadd.f32 %v531_v23, %v513_v19  ;;  %v538_v51 = vadd.f32 %v532_v62, %v514_v6 }
  0xda   : > { %v1302_v58 = vmul.f32 %v425_v43, %v407_v17  ;;  %v585_v6 = vmul.f32 %v1177_v27, %v1250_v38 }
  0xdb   : > { %v398_v4 = vpop.permute.xlu1 %397  ;;  %456 = vrot.lane.b32.xlu1 %v450_v60, %s1023_s12  ;;  %v448_v5 = vmul.f32 %v1175_v26, %v1272_v57 }
  0xdc   : > { %v403_v10 = vsel %vm401_vm1, %v1204_v46, %v398_v4  ;;  %v406_v15 = vsel %vm401_vm1, %v398_v4, %v1204_v46  ;;  %v601_v4 = vmul.f32 %v1185_v33, %v1132_v12 }
  0xdd   : > { %v428_v32 = vmul.f32 %v421_v3, %v403_v10  ;;  %v429_v31 = vmul.f32 %v425_v43, %v406_v15  ;;  %v454_v47 = vadd.f32 %v448_v5, %v387_v53  ;;  %v445_v3 = vmul.f32 %v1171_v24, %v1287_v20 }
  0xde   : > { %v384_v43 = vadd.f32 %v378_v44, %v360_v18  ;;  %v607_v62 = vadd.f32 %v601_v4, %v583_v1  ;;  %v605_v24 = vmul.f32 %v1189_v36, %v1136_v13  ;;  %v449_v5 = vmul.f32 %v1175_v26, %v1302_v58 }
  0xdf   : > { %v555_v21 = vmul.f32 %v547_v16, %v428_v32  ;;  %v556_v55 = vmul.f32 %v547_v16, %v429_v31  ;;  %v501_v60 = vpop.permute.xlu1 %500  ;;  %460 = vrot.lane.b32.xlu1 %v454_v47, %s1023_s12  ;;  %v446_v39 = vmul.f32 %v1173_v25, %v428_v32  ;;  %v447_v46 = vmul.f32 %v1173_v25, %v429_v31 }
  0xe0   : > { %v587_v25 = vmul.f32 %v1183_v30, %v1236_v7  ;;  %v451_v19 = vadd.f32 %v445_v3, %v384_v43  ;;  %v631_v53 = vadd.f32 %v625_v48, %v607_v62  ;;  %v586_v10 = vmul.f32 %v1177_v27, %v1252_v42  ;;  %v1445_v62 = vld [vmem:[#allocation2_spill] sm:$0xff] }
  0xe1   : > { %v1308_v45 = vadd.f32 %v555_v21, %v537_v50  ;;  %v1310_v54 = vadd.f32 %v556_v55, %v538_v51  ;;  %v452_v22 = vadd.f32 %v446_v39, %v385_v2  ;;  %v453_v61 = vadd.f32 %v447_v46, %v386_v52 }
  0xe2   : > { %v629_v39 = vmul.f32 %v1226_v0, %v1272_v57  ;;  %v611_v44 = vadd.f32 %v605_v24, %v587_v25  ;;  %v603_v18 = vmul.f32 %v1181_v29, %v1120_v8  ;;  %v604_v26 = vmul.f32 %v1181_v29, %v1140_v14 }
  0xe3   : > { %458 = vrot.lane.b32.xlu0 %v452_v22, %s1023_s12  ;;  %v509_v23 = vpop.permute.xlu1 %508  ;;  %464 = vrot.lane.b32.xlu1 %v453_v61, %s1023_s12  ;;  %v455_v15 = vadd.f32 %v449_v5, %v1216_v56  ;;  %v627_v38 = vmul.f32 %v1197_v40, %v428_v32  ;;  %v628_v27 = vmul.f32 %v1197_v40, %v429_v31 }
  0xe4   : > { %v635_v16 = vadd.f32 %v629_v39, %v611_v44  ;;  %v584_v42 = vmul.f32 %v1179_v28, %v1246_v34  ;;  %v609_v17 = vadd.f32 %v603_v18, %v585_v6  ;;  %v610_v8 = vadd.f32 %v604_v26, %v586_v10 }
  0xe5   : > { %v602_v14 = vmul.f32 %v1185_v33, %v1124_v9  ;;  %v626_v56 = vmul.f32 %v1218_v59, %v1287_v20  ;;  %v588_v50 = vmul.f32 %v1183_v30, %v1208_v49  ;;  %v511_v51 = vmul.f32 %v501_v60, %v1224_v63 }
  0xe6   : > { %v633_v31 = vadd.f32 %v627_v38, %v609_v17  ;;  %v634_v47 = vadd.f32 %v628_v27, %v610_v8  ;;  %v512_v2 = vmul.f32 %v501_v60, %v1246_v34  ;;  %v606_v33 = vmul.f32 %v1189_v36, %v1128_v11 }
  0xe7   : > { %462 = vrot.lane.b32.xlu0 %v451_v19, %s1023_s12  ;;  %637 = vrot.lane.b32.xlu1 %v631_v53, %s1024_s13  ;;  %v608_v28 = vadd.f32 %v602_v14, %v584_v42  ;;  %v630_v21 = vmul.f32 %v1226_v0, %v1302_v58  ;;  %v515_v36 = vmul.f32 %v509_v23, %v1236_v7  ;;  %v477_v7 = vsub.s32 0, %v1187_v35 }
  0xe8   : > { %v519_v1 = vpop.permute.xlu1 %518  ;;  %v612_v60 = vadd.f32 %v606_v33, %v588_v50  ;;  %v516_v46 = vmul.f32 %v509_v23, %v1208_v49  ;;  %v481_v49 = vsub.s32 4, %v1187_v35  ;;  %v662_v53 = vsub.s32 5, %v1187_v35 }
  0xe9   : > { %v529_v32 = vmul.f32 %v519_v1, %v1132_v12  ;;  %v530_v40 = vmul.f32 %v519_v1, %v1124_v9  ;;  %v632_v52 = vadd.f32 %v626_v56, %v608_v28  ;;  %v478_v24 = vrot.slane %v1445_v62, %v477_v7 }
  0xea   : > { %v636_v22 = vadd.f32 %v630_v21, %v612_v60  ;;  %v663_v26 = vrot.slane %v1445_v62, %v662_v53 }
  0xeb   : > { %466 = vrot.lane.b32.xlu0 %v455_v15, %s1023_s12  ;;  %641 = vrot.lane.b32.xlu1 %v635_v16, %s1024_s13  ;;  %v535_v12 = vadd.f32 %v529_v32, %v511_v51  ;;  %v536_v59 = vadd.f32 %v530_v40, %v512_v2  ;;  %v488_v5 = vrot.slane %v478_v24, %v477_v7 }
  0xec   : > { %v527_v29 = vpop.permute.xlu1 %526 }
  0xed   : > { %v533_v30 = vmul.f32 %v527_v29, %v1136_v13  ;;  %v534_v63 = vmul.f32 %v527_v29, %v1128_v11 }
  0xef   : > { %639 = vrot.lane.b32.xlu0 %v633_v31, %s1024_s13  ;;  %645 = vrot.lane.b32.xlu1 %v634_v47, %s1024_s13  ;;  %v539_v0 = vadd.f32 %v533_v30, %v515_v36  ;;  %v540_v61 = vadd.f32 %v534_v63, %v516_v46 }
  0xf1   : > { %v543_v9 = vpop.permute.xlu1 %542 }
  0xf2   : > { %v553_v34 = vmul.f32 %v543_v9, %v1248_v37  ;;  %v554_v55 = vmul.f32 %v543_v9, %v1287_v20 }
  0xf3   : > { %643 = vrot.lane.b32.xlu0 %v632_v52, %s1024_s13 }
  0xf4   : > { %v559_v4 = vadd.f32 %v553_v34, %v535_v12  ;;  %v560_v3 = vadd.f32 %v554_v55, %v536_v59 }
  0xf5   : > { %v551_v48 = vpop.permute.xlu1 %550 }
  0xf6   : > { %v557_v13 = vmul.f32 %v551_v48, %v1272_v57  ;;  %v558_v11 = vmul.f32 %v551_v48, %v1302_v58  ;;  %v482_v57 = vrot.slane %v1445_v62, %v481_v49  ;;  %v658_v58 = vsub.s32 1, %v1187_v35 }
  0xf7   : > { %647 = vrot.lane.b32.xlu0 %v636_v22, %s1024_s13 }
  0xf8   : > { %v563_v37 = vadd.f32 %v557_v13, %v539_v0  ;;  %v1365_v20 = vadd.f32 %v558_v11, %v540_v61  ;;  %v492_v44 = vrot.slane %v482_v57, %v477_v7  ;;  %v659_v18 = vrot.slane %v1445_v62, %v658_v58 }
  0xf9   : > { %v673_v8 = vrot.slane %v663_v26, %v658_v58 }
  0xfa   : > { %v669_v17 = vrot.slane %v659_v18, %v658_v58 }
 0x14d   : > { %v457_v25 = vpop.permute.xlu1 %456 }
 0x151   : > { %v461_v43 = vpop.permute.xlu1 %460 }
 0x155   : > { %v459_v23 = vpop.permute.xlu0 %458  ;;  %v465_v19 = vpop.permute.xlu1 %464 }
 0x156   : > { %v473_v10 = vsel %vm468_vm2, %v465_v19, %v459_v23  ;;  %v470_v1 = vsel %vm468_vm2, %v459_v23, %v465_v19 }
 0x157   : > { %v495_v15 = vmul.f32 %v488_v5, %v473_v10  ;;  %v496_v27 = vmul.f32 %v492_v44, %v470_v1 }
 0x159   : > { %v463_v39 = vpop.permute.xlu0 %462  ;;  %v638_v6 = vpop.permute.xlu1 %637  ;;  %v567_v14 = vadd.f32 %v1308_v45, %v495_v15  ;;  %v568_v50 = vadd.f32 %v1310_v54, %v496_v27 }
 0x15a   : > { %v472_v35 = vsel %vm468_vm2, %v463_v39, %v457_v25  ;;  %v469_v42 = vsel %vm468_vm2, %v457_v25, %v463_v39 }
 0x15b   : > { %v493_v29 = vmul.f32 %v488_v5, %v472_v35  ;;  %v494_v40 = vmul.f32 %v492_v44, %v469_v42 }
 0x15d   : > { %v467_v16 = vpop.permute.xlu0 %466  ;;  %v642_v38 = vpop.permute.xlu1 %641  ;;  %v565_v33 = vadd.f32 %v559_v4, %v493_v29  ;;  %v566_v21 = vadd.f32 %v560_v3, %v494_v40 }
 0x15e   : > { %v474_v31 = vsel %vm468_vm2, %v467_v16, %v461_v43  ;;  %v471_v51 = vsel %vm468_vm2, %v461_v43, %v467_v16 }
 0x15f   : > { %v497_v12 = vmul.f32 %v488_v5, %v474_v31  ;;  %v498_v54 = vmul.f32 %v492_v44, %v471_v51 }
 0x161   : > { %v640_v56 = vpop.permute.xlu0 %639  ;;  %v646_v32 = vpop.permute.xlu1 %645  ;;  %v569_v4 = vadd.f32 %v563_v37, %v497_v12  ;;  %v570_v0 = vadd.f32 %v1365_v20, %v498_v54 }
 0x162   : > { %v651_v47 = vsel %vm649_vm3, %v640_v56, %v646_v32  ;;  %v654_v28 = vsel %vm649_vm3, %v646_v32, %v640_v56 }
 0x163   : > { %v676_v2 = vmul.f32 %v669_v17, %v651_v47  ;;  %v677_v45 = vmul.f32 %v673_v8, %v654_v28 }
 0x165   : > { %v682_v59 = vadd.f32 %v676_v2, %v567_v14  ;;  %v683_v9 = vadd.f32 %v677_v45, %v568_v50  ;;  %v644_v52 = vpop.permute.xlu0 %643 }
 0x166   : > { %v650_v30 = vsel %vm649_vm3, %v638_v6, %v644_v52  ;;  %v653_v63 = vsel %vm649_vm3, %v644_v52, %v638_v6 }
 0x167   : > { %688 = vst [vmem:[%s1400_s23 + $0x10] sm:$0xff] %v682_v59  ;;  %689 = vst [vmem:[%s1400_s23 + $0x18] sm:$0xff] %v683_v9  ;;  %v674_v34 = vmul.f32 %v669_v17, %v650_v30  ;;  %v675_v55 = vmul.f32 %v673_v8, %v653_v63  ;;  %v695_v60 = vadd.f32 %v683_v9, %v682_v59 }
 0x168   : > { %v703_v36 = vmul.f32 %v682_v59, %v682_v59  ;;  %v704_v46 = vmul.f32 %v683_v9, %v683_v9 }
 0x169   : > { %v680_v48 = vadd.f32 %v674_v34, %v565_v33  ;;  %v681_v22 = vadd.f32 %v675_v55, %v566_v21  ;;  %v648_v3 = vpop.permute.xlu0 %647  ;;  %696 = vadd.xlane.f32.xlu0 %v695_v60 }
 0x16a   : > { %v652_v61 = vsel %vm649_vm3, %v642_v38, %v648_v3  ;;  %v655_v13 = vsel %vm649_vm3, %v648_v3, %v642_v38  ;;  %v710_v11 = vadd.f32 %v704_v46, %v703_v36 }
 0x16b   : > { %686 = vst [vmem:[%s1400_s23] sm:$0xff] %v680_v48  ;;  %687 = vst [vmem:[%s1400_s23 + $0x8] sm:$0xff] %v681_v22  ;;  %v678_v25 = vmul.f32 %v669_v17, %v652_v61  ;;  %v679_v43 = vmul.f32 %v673_v8, %v655_v13  ;;  %v692_v37 = vadd.f32 %v681_v22, %v680_v48 }
 0x16c   : > { %v701_v7 = vmul.f32 %v680_v48, %v680_v48  ;;  %v702_v49 = vmul.f32 %v681_v22, %v681_v22 }
 0x16d   : > { %v684_v23 = vadd.f32 %v678_v25, %v569_v4  ;;  %v685_v62 = vadd.f32 %v679_v43, %v570_v0  ;;  %693 = vadd.xlane.f32.xlu1 %v692_v37 }
 0x16e   : > { %v707_v20 = vadd.f32 %v702_v49, %v701_v7 }
 0x16f   : > { %690 = vst [vmem:[%s1400_s23 + $0x20] sm:$0xff] %v684_v23  ;;  %691 = vst [vmem:[%s1400_s23 + $0x28] sm:$0xff] %v685_v62  ;;  %v698_v24 = vadd.f32 %v685_v62, %v684_v23  ;;  %v705_v19 = vmul.f32 %v684_v23, %v684_v23  ;;  %v706_v41 = vmul.f32 %v685_v62, %v685_v62 }
 0x171   : > { %708 = vadd.xlane.f32.xlu1 %v707_v20  ;;  %699 = vadd.xlane.f32.xlu0 %v698_v24  ;;  %v713_v57 = vadd.f32 %v706_v41, %v705_v19 }
 0x175   : > { %714 = vadd.xlane.f32.xlu1 %v713_v57  ;;  %711 = vadd.xlane.f32.xlu0 %v710_v11 }
 0x1f6   : > { %v697_v58 = vpop.xlane.xlu0 %696 }
 0x1fa   : > { %v694_v53 = vpop.xlane.xlu1 %693 }
 0x1fe   : > { %v700_v5 = vpop.xlane.xlu0 %699  ;;  %v709_v39 = vpop.xlane.xlu1 %708 }
 0x1ff   : > { %v717_v6 = vsel %vm716_vm4, %v694_v53, %v709_v39 }
 0x200   : > { %721 = vst.msk [vmem:[%s286_s29] sm:$0xff] %vm720_vm5, %v717_v6 }
 0x202   : > { %v712_v10 = vpop.xlane.xlu0 %711  ;;  %v715_v44 = vpop.xlane.xlu1 %714 }
 0x203   : > { %v718_v18 = vsel %vm716_vm4, %v697_v58, %v712_v10  ;;  %v719_v26 = vsel %vm716_vm4, %v700_v5, %v715_v44 }
 0x204   : > { %722 = vst.msk [vmem:[%s286_s29 + $0x8] sm:$0xff] %vm720_vm5, %v718_v18  ;;  %723 = vst.msk [vmem:[%s286_s29 + $0x10] sm:$0xff] %vm720_vm5, %v719_v26 }
 0x205 PF: > { %s15_s19 = sadd.s32 1, %s1010_s19   ;;  %s1446_s15 = smov %s1002_s17 }
 0x206   : > { %p12_p7 = scmp.ge.s32.totalorder %s15_s19, 8   ;;  %s1447_s16 = smov %s1006_s18 }
 0x207   : > { %s1448_s17 = smov %s1451_s20  ;;  %s1449_s18 = smov %s1455_s21 }
 0x208   :  { %14 = sbr.rel (!%p12_p7) target bundleno = 3 (0x3), region = 77 }

</bundles_post_ra>
